<compile_context>
chip_gen: v7x
topology: tpu7x:2x2x1
jax: 0.10.0
libtpu: 0.0.40
codegen_flags: <defaults>
</compile_context>

<pallas_src>
import functools
import re

import numpy as np
import jax
import jax.numpy as jnp
from jax import lax
from jax.experimental import pallas as pl
from jax.experimental.pallas import tpu as pltpu


def _round_up(x, m):
    return (x + m - 1) // m * m


def _tpu_generation():
    """Best-effort TPU generation (4/5/6/7...) parsed from device_kind."""
    try:
        kind = str(jax.devices()[0].device_kind)
    except Exception:
        return None
    m = re.search(r"(\d+)", kind)
    return int(m.group(1)) if m else None


def _vmem_capacity_bytes(gen):
    """Physical per-core VMEM capacity, with a generation-based fallback."""
    try:
        cap = getattr(pltpu.get_tpu_info(), "vmem_capacity_bytes", None)
        if cap:
            return int(cap)
    except Exception:
        pass
    if gen is not None and gen >= 7:
        return 64 * 1024 * 1024
    if gen is not None:
        return 128 * 1024 * 1024
    return 64 * 1024 * 1024            # unknown chip: be conservative


def _pad_gate_blocks(a, h, h_pad):
    """Pad last axis (= 4*h, gate order [i, f, o, g]) to 4*h_pad, per gate block."""
    if h_pad == h:
        return a
    a4 = a.reshape(a.shape[:-1] + (4, h))
    pad = [(0, 0)] * (a4.ndim - 1) + [(0, h_pad - h)]
    return jnp.pad(a4, pad).reshape(a.shape[:-1] + (4 * h_pad,))


def _lstm_seq_kernel(gx_ref, h0_ref, c0_ref, wh_ref,
                     y_ref, hT_ref, cT_ref,
                     h_scr, c_scr, *, t_real, t_pad, unroll, gate_dtype):
    """One grid step = one (batch-tile, time-chunk).

    gx_ref : (Tc, Bt, 4*Hp)  precomputed x-projection (+ bias, + forget_bias)
    wh_ref : (Hp, 4*Hp)      mxu dtype (bf16 by default)
    h/c scratch carry the recurrent state across time chunks (f32).
    """
    t_chunk = pl.program_id(1)
    nt = pl.num_programs(1)
    tc = gx_ref.shape[0]
    hp = h_scr.shape[1]
    padded = (t_pad != t_real)             # static

    # (Re)load the initial state at the start of each batch tile's time loop.
    @pl.when(t_chunk == 0)
    def _():
        h_scr[...] = h0_ref[...].astype(jnp.float32)
        c_scr[...] = c0_ref[...].astype(jnp.float32)

    wh = wh_ref[...]                       # constant block, fetched once
    t_base = t_chunk * tc

    def step(j, carry):
        h, c = carry
        # gates: (Bt, 4Hp) = precomputed x-part + recurrent MXU matmul (f32 acc).
        gates = gx_ref[j].astype(jnp.float32) + jnp.dot(
            h.astype(wh.dtype), wh, preferred_element_type=jnp.float32)
        # Gate order of the module: [i, f, o, c_cand]; lane-aligned 128-wide
        # slices. Transcendentals optionally in bf16 (v6e/v7x EUP), carry in f32.
        i_g = jax.nn.sigmoid(gates[:, 0 * hp:1 * hp].astype(gate_dtype))
        f_g = jax.nn.sigmoid(gates[:, 1 * hp:2 * hp].astype(gate_dtype))
        o_g = jax.nn.sigmoid(gates[:, 2 * hp:3 * hp].astype(gate_dtype))
        g_g = jnp.tanh(gates[:, 3 * hp:4 * hp].astype(gate_dtype))

        c_new = f_g * c + i_g * g_g.astype(jnp.float32)   # f32 accumulation
        h_new = o_g * jnp.tanh(c_new)                     # f32 (promotion)

        y_ref[j] = h_new.astype(y_ref.dtype)

        if padded:
            # Capture the exact final state at the last REAL step; padded steps
            # only write (discarded) y rows and the dead scratch carry, so no
            # per-step vector masking of h/c is needed.
            @pl.when(t_base + j == t_real - 1)
            def _():
                hT_ref[...] = h_new.astype(hT_ref.dtype)
                cT_ref[...] = c_new.astype(cT_ref.dtype)

        return (h_new, c_new)

    h_fin, c_fin = lax.fori_loop(0, tc, step, (h_scr[...], c_scr[...]),
                                 unroll=unroll)

    h_scr[...] = h_fin
    c_scr[...] = c_fin

    if not padded:
        # Only the final chunk needs to materialize the final state.
        @pl.when(t_chunk == nt - 1)
        def _():
            hT_ref[...] = h_fin.astype(hT_ref.dtype)
            cT_ref[...] = c_fin.astype(cT_ref.dtype)


@functools.partial(jax.jit, static_argnames=("forget_bias", "mxu_dtype",
                                              "time_chunk", "out_dtype"))
def lstm_cell_sequence(inputs, state, params, *, forget_bias=1.0,
                       mxu_dtype=jnp.bfloat16, time_chunk=None, out_dtype=None):
    """Apply the LSTMCell over a time-major sequence.

    inputs : (T, B, I)
    state  : (h0, c0), each (B, H)
    params : dict with w_ih (4H, I), w_hh (4H, H), bias (4H,)
    returns (outputs (T, B, H), (hT, cT))

    mxu_dtype=jnp.float32 gives an accuracy-first path (f32 MXU operands,
    f32 gx stream, f32 gate math); the bf16 default is the fast path.
    """
    h0, c0 = state
    T, B, I = inputs.shape
    H = h0.shape[-1]
    out_dtype = inputs.dtype if out_dtype is None else out_dtype

    gen = _tpu_generation()
    vmem_budget = int(_vmem_capacity_bytes(gen) * 0.85)  # headroom for Mosaic

    mxu_is_bf16 = np.dtype(mxu_dtype) == np.dtype(jnp.bfloat16)
    gx_dtype = jnp.bfloat16 if mxu_is_bf16 else jnp.float32
    # bf16 transcendentals only where the EUP/VPU has a native bf16 path.
    gate_dtype = (jnp.bfloat16
                  if (mxu_is_bf16 and gen is not None and gen >= 6)
                  else jnp.float32)

    # ---- alignment / padding (lane-dense gates and outputs) ----
    H_pad = _round_up(H, 128)
    B_pad = _round_up(B, 8)

    # Batch tiling: only split across TensorCores on 2-TC chips (v7x) and only
    # when each tile keeps >= 64 rows of MXU occupancy.  Single-TC chips
    # (v5e/v6e) keep one big tile so W_hh pushes are amortized over all rows.
    two_tc = gen is not None and gen >= 7
    if two_tc and B_pad >= 128:
        B_pad = _round_up(B_pad, 16)
        nb = 2
    else:
        nb = 1
    Bt = B_pad // nb

    # ---- VMEM-derived time-chunk size ----
    gx_bytes = np.dtype(gx_dtype).itemsize
    y_bytes = np.dtype(out_dtype).itemsize
    w_bytes = np.dtype(mxu_dtype).itemsize
    wh_block_bytes = H_pad * 4 * H_pad * w_bytes
    # Single-buffer the constant W_hh block when double-buffering it would eat
    # a large fraction of VMEM (the v7x large-H case); it is fetched only once.
    single_buffer_wh = (2 * wh_block_bytes > vmem_budget // 4)
    wh_bufs = 1 if single_buffer_wh else 2
    fixed = (wh_bufs * wh_block_bytes
             + 4 * 2 * Bt * H_pad * 4          # h0, c0, hT, cT (double-buffered)
             + 2 * Bt * H_pad * 4)             # h/c scratch
    per_tc = 2 * Bt * (4 * H_pad * gx_bytes + H_pad * y_bytes)  # gx + y, 2 bufs

    if time_chunk is not None:
        Tc = max(1, min(int(time_chunk), T))
    else:
        Tc = max(1, (vmem_budget - fixed) // per_tc)
        Tc = int(min(Tc, T, 256))
        if T % Tc != 0:
            # Prefer a Tc that divides T exactly (no padded time steps).
            d = max(d for d in range(1, Tc + 1) if T % d == 0)
            if d >= max(1, Tc // 2):
                Tc = d
    T_pad = _round_up(T, Tc)
    nt = T_pad // Tc

    # ---- parameter prep (gate order [i, f, o, g], each gate padded H -> H_pad) ----
    wx = _pad_gate_blocks(params["w_ih"].T.astype(jnp.float32), H, H_pad)   # (I, 4Hp)
    wh = _pad_gate_blocks(params["w_hh"].T.astype(jnp.float32), H, H_pad)   # (H, 4Hp)
    wh = jnp.pad(wh, ((0, H_pad - H), (0, 0))).astype(mxu_dtype)            # (Hp, 4Hp)

    bias = params["bias"].astype(jnp.float32)
    bias = bias.at[H:2 * H].add(forget_bias)        # fold forget_bias into f-gate
    bias = _pad_gate_blocks(bias, H, H_pad)         # (4Hp,)

    # ---- hoisted input projection, laid out as contiguous per-tile slabs ----
    xp = jnp.pad(inputs, ((0, T_pad - T), (0, B_pad - B), (0, 0)))           # (Tp,Bp,I)
    xp = xp.reshape(T_pad, nb, Bt, I).transpose(1, 0, 2, 3)                  # (nb,Tp,Bt,I)
    gx = jnp.dot(xp.reshape(nb * T_pad * Bt, I).astype(mxu_dtype),
                 wx.astype(mxu_dtype), preferred_element_type=jnp.float32)
    gx = (gx + bias[None, :]).astype(gx_dtype)        # bf16 stream on the fast path
    gx = gx.reshape(nb, T_pad, Bt, 4 * H_pad)

    h0p = jnp.pad(h0.astype(jnp.float32), ((0, B_pad - B), (0, H_pad - H)))
    c0p = jnp.pad(c0.astype(jnp.float32), ((0, B_pad - B), (0, H_pad - H)))

    # ---- specs ----
    wh_kwargs = {}
    if single_buffer_wh:
        wh_kwargs["pipeline_mode"] = pl.Buffered(1)   # constant block, never re-fetched
    wh_spec = pl.BlockSpec((H_pad, 4 * H_pad), lambda b, t: (0, 0), **wh_kwargs)

    grid_spec = pltpu.PrefetchScalarGridSpec(
        num_scalar_prefetch=0,
        grid=(nb, nt),
        in_specs=[
            pl.BlockSpec((None, Tc, Bt, 4 * H_pad), lambda b, t: (b, t, 0, 0)),  # gx
            pl.BlockSpec((Bt, H_pad), lambda b, t: (b, 0)),                      # h0
            pl.BlockSpec((Bt, H_pad), lambda b, t: (b, 0)),                      # c0
            wh_spec,                                                             # W_hh^T
        ],
        out_specs=[
            pl.BlockSpec((None, Tc, Bt, H_pad), lambda b, t: (b, t, 0, 0)),      # y
            pl.BlockSpec((Bt, H_pad), lambda b, t: (b, 0)),                      # hT
            pl.BlockSpec((Bt, H_pad), lambda b, t: (b, 0)),                      # cT
        ],
        scratch_shapes=[
            pltpu.VMEM((Bt, H_pad), jnp.float32),                                # h carry
            pltpu.VMEM((Bt, H_pad), jnp.float32),                                # c carry
        ],
    )

    y_pad, hT_pad, cT_pad = pl.pallas_call(
        functools.partial(_lstm_seq_kernel, t_real=T, t_pad=T_pad,
                          unroll=min(Tc, 8), gate_dtype=gate_dtype),
        out_shape=(
            jax.ShapeDtypeStruct((nb, T_pad, Bt, H_pad), out_dtype),
            jax.ShapeDtypeStruct((B_pad, H_pad), h0.dtype),
            jax.ShapeDtypeStruct((B_pad, H_pad), c0.dtype),
        ),
        grid_spec=grid_spec,
        compiler_params=pltpu.CompilerParams(
            dimension_semantics=("parallel", "arbitrary"),
            vmem_limit_bytes=int(vmem_budget)),
    )(gx, h0p, c0p, wh)

    y = y_pad.transpose(1, 0, 2, 3).reshape(T_pad, B_pad, H_pad)[:T, :B, :H]
    hT = hT_pad[:B, :H]
    cT = cT_pad[:B, :H]
    return y, (hT, cT)


def lstm_cell_forward(x, state, params, *, forget_bias=1.0,
                      mxu_dtype=jnp.bfloat16):
    """Exact LSTMCell.forward: x (B, I), state (h, c) -> (h', (h', c'))."""
    y, (h, c) = lstm_cell_sequence(x[None], state, params,
                                   forget_bias=forget_bias, mxu_dtype=mxu_dtype)
    return y[0], (h, c)


# ----------------------------- pure-JAX references -----------------------------
def _ref_cell(x, state, params, forget_bias=1.0):
    h, c = state
    gates = x @ params["w_ih"].T + h @ params["w_hh"].T + params["bias"]
    i_g, f_g, o_g, g_g = jnp.split(gates, 4, axis=1)
    i_g = jax.nn.sigmoid(i_g)
    f_g = jax.nn.sigmoid(f_g + forget_bias)
    o_g = jax.nn.sigmoid(o_g)
    g_g = jnp.tanh(g_g)
    c = f_g * c + i_g * g_g            # r_dropout identity in eval mode
    h = o_g * jnp.tanh(c)
    return h, (h, c)


def _ref_sequence(inputs, state, params, forget_bias=1.0):
    def step(carry, x_t):
        _, (h, c) = _ref_cell(x_t, carry, params, forget_bias)
        return (h, c), h
    (hT, cT), ys = lax.scan(step, state, inputs)
    return ys, (hT, cT)


if __name__ == "__main__":
    # Small deterministic shapes: seq=8, batch=2, input_size=16, hidden=32.
    T, B, I, H = 8, 2, 16, 32
    key = jax.random.PRNGKey(0)
    k0, k1, k2, k3, k4, k5 = jax.random.split(key, 6)

    bound = 1.0 / jnp.sqrt(H)
    params = {
        "w_ih": jax.random.uniform(k0, (4 * H, I), jnp.float32, -bound, bound),
        "w_hh": jax.random.uniform(k1, (4 * H, H), jnp.float32, -bound, bound),
        "bias": jax.random.uniform(k2, (4 * H,), jnp.float32, -bound, bound),
    }
    xs = jax.random.normal(k3, (T, B, I), jnp.float32)
    h0 = jax.random.normal(k4, (B, H), jnp.float32)
    c0 = jax.random.normal(k5, (B, H), jnp.float32)

    y_r, (hT_r, cT_r) = _ref_sequence(xs, (h0, c0), params)

    # Tolerances: TPU f32 matmuls (both in the kernel and in the XLA reference)
    # use MXU bf16-pass algorithms at default precision, so the "f32" paths are
    # compared at 2e-2; the bf16 fast path at 8e-2 (bf16 operands + bf16 gates).

    # 1) Single-step cell (the module's forward), f32 MXU operands.
    h1, (hs, cs) = lstm_cell_forward(xs[0], (h0, c0), params,
                                     mxu_dtype=jnp.float32)
    jax.block_until_ready((h1, hs, cs))
    h1_r, (hs_r, cs_r) = _ref_cell(xs[0], (h0, c0), params)
    assert jnp.allclose(h1, h1_r, atol=2e-2, rtol=2e-2)
    assert jnp.allclose(hs, hs_r, atol=2e-2, rtol=2e-2)
    assert jnp.allclose(cs, cs_r, atol=2e-2, rtol=2e-2)

    # 2) Sequence, f32 MXU operands: checks the recurrence + final state.
    y32, (hT32, cT32) = lstm_cell_sequence(xs, (h0, c0), params,
                                           mxu_dtype=jnp.float32)
    jax.block_until_ready((y32, hT32, cT32))
    assert jnp.allclose(y32, y_r, atol=2e-2, rtol=2e-2)
    assert jnp.allclose(hT32, hT_r, atol=2e-2, rtol=2e-2)
    assert jnp.allclose(cT32, cT_r, atol=2e-2, rtol=2e-2)

    # 3) Sequence with a time chunk that does NOT divide T: exercises the
    #    padded-time / exact-final-state path.
    y_p, (hT_p, cT_p) = lstm_cell_sequence(xs, (h0, c0), params,
                                           mxu_dtype=jnp.float32, time_chunk=3)
    jax.block_until_ready((y_p, hT_p, cT_p))
    assert jnp.allclose(y_p, y_r, atol=2e-2, rtol=2e-2)
    assert jnp.allclose(hT_p, hT_r, atol=2e-2, rtol=2e-2)
    assert jnp.allclose(cT_p, cT_r, atol=2e-2, rtol=2e-2)

    # 4) Default fast path (bf16 MXU operands and gx stream, f32 accumulation).
    y, (hT, cT) = lstm_cell_sequence(xs, (h0, c0), params)
    jax.block_until_ready((y, hT, cT))
    assert jnp.allclose(y, y_r, atol=8e-2, rtol=5e-2)
    assert jnp.allclose(hT, hT_r, atol=8e-2, rtol=5e-2)
    assert jnp.allclose(cT, cT_r, atol=8e-2, rtol=5e-2)

    print("KERNEL_OK")
</pallas_src>

<mosaic_0001>
module attributes {stable_mosaic.version = 11 : i64} {
  func.func @_lstm_seq_kernel(%arg0: i32, %arg1: i32, %arg2: memref<1x1x8x512xf32, #tpu.memory_space<vmem>>, %arg3: memref<8x128xf32, #tpu.memory_space<vmem>>, %arg4: memref<8x128xf32, #tpu.memory_space<vmem>>, %arg5: memref<128x512xf32, #tpu.memory_space<vmem>>, %arg6: memref<1x1x8x128xf32, #tpu.memory_space<vmem>>, %arg7: memref<8x128xf32, #tpu.memory_space<vmem>>, %arg8: memref<8x128xf32, #tpu.memory_space<vmem>>, %arg9: memref<8x128xf32, #tpu.memory_space<vmem>>, %arg10: memref<8x128xf32, #tpu.memory_space<vmem>>) attributes {dimension_semantics = [#tpu.dimension_semantics<parallel>, #tpu.dimension_semantics<arbitrary>], iteration_bounds = array<i64: 1, 1>, scalar_prefetch = 0 : i64, scratch_operands = 2 : i64, tpu.core_type = #tpu.core_type<tc>, window_params = [{transform_indices = @transform_0, window_bounds = array<i64: 1, 1, 8, 512>}, {transform_indices = @transform_1, window_bounds = array<i64: 8, 128>}, {transform_indices = @transform_2, window_bounds = array<i64: 8, 128>}, {pipeline_mode = #tpu.pipeline_mode<synchronous>, transform_indices = @transform_3, window_bounds = array<i64: 128, 512>}, {transform_indices = @transform_4, window_bounds = array<i64: 1, 1, 8, 128>}, {transform_indices = @transform_5, window_bounds = array<i64: 8, 128>}, {transform_indices = @transform_6, window_bounds = array<i64: 8, 128>}]} {
    %c0_i32 = arith.constant 0 : i32
    %0 = arith.cmpi eq, %arg1, %c0_i32 : i32
    %1 = arith.extui %0 : i1 to i32
    %c0_i32_0 = arith.constant 0 : i32
    %2 = arith.cmpi ne, %1, %c0_i32_0 : i32
    scf.if %2 {
      %c0_22 = arith.constant 0 : index
      %c0_23 = arith.constant 0 : index
      %45 = vector.load %arg3[%c0_22, %c0_23] : memref<8x128xf32, #tpu.memory_space<vmem>>, vector<8x128xf32>
      %c0_24 = arith.constant 0 : index
      %c0_25 = arith.constant 0 : index
      %46 = vector.load %arg9[%c0_24, %c0_25] : memref<8x128xf32, #tpu.memory_space<vmem>>, vector<8x128xf32>
      tpu.vector_store %arg9[%c0_24, %c0_25], %45 {strides = array<i32>} : memref<8x128xf32, #tpu.memory_space<vmem>>, vector<8x128xf32>,
      %c0_26 = arith.constant 0 : index
      %c0_27 = arith.constant 0 : index
      %47 = vector.load %arg4[%c0_26, %c0_27] : memref<8x128xf32, #tpu.memory_space<vmem>>, vector<8x128xf32>
      %c0_28 = arith.constant 0 : index
      %c0_29 = arith.constant 0 : index
      %48 = vector.load %arg10[%c0_28, %c0_29] : memref<8x128xf32, #tpu.memory_space<vmem>>, vector<8x128xf32>
      tpu.vector_store %arg10[%c0_28, %c0_29], %47 {strides = array<i32>} : memref<8x128xf32, #tpu.memory_space<vmem>>, vector<8x128xf32>,
    } else {
    }
    %c0 = arith.constant 0 : index
    %c0_1 = arith.constant 0 : index
    %3 = vector.load %arg5[%c0, %c0_1] : memref<128x512xf32, #tpu.memory_space<vmem>>, vector<128x512xf32>
    %c0_2 = arith.constant 0 : index
    %c0_3 = arith.constant 0 : index
    %4 = vector.load %arg9[%c0_2, %c0_3] : memref<8x128xf32, #tpu.memory_space<vmem>>, vector<8x128xf32>
    %c0_4 = arith.constant 0 : index
    %c0_5 = arith.constant 0 : index
    %5 = vector.load %arg10[%c0_4, %c0_5] : memref<8x128xf32, #tpu.memory_space<vmem>>, vector<8x128xf32>
    %c0_i32_6 = arith.constant 0 : i32
    %c0_7 = arith.constant 0 : index
    %6 = arith.index_cast %c0_i32_6 : i32 to index
    %c0_8 = arith.constant 0 : index
    %c0_9 = arith.constant 0 : index
    %7 = vector.load %arg2[%c0_7, %6, %c0_8, %c0_9] : memref<1x1x8x512xf32, #tpu.memory_space<vmem>>, vector<1x1x8x512xf32>
    %8 = vector.shape_cast %7 : vector<1x1x8x512xf32> to vector<8x512xf32>
    %cst = arith.constant dense<0.000000e+00> : vector<8x512xf32>
    %9 = tpu.matmul %4, %3, %cst {dimension_numbers = #tpu.dot_dimension_numbers<[1], [0], [0], [1], [0, 0, 1, 1], [], []>} : vector<8x128xf32>, vector<128x512xf32>, vector<8x512xf32> -> vector<8x512xf32>
    %10 = arith.addf %8, %9 : vector<8x512xf32>
    %11 = vector.extract_strided_slice %10 {offsets = [0, 0], sizes = [8, 128], strides = [1, 1]} : vector<8x512xf32> to vector<8x128xf32>
    %12 = arith.negf %11 : vector<8x128xf32>
    %13 = math.exp %12 : vector<8x128xf32>
    %cst_10 = arith.constant 1.000000e+00 : f32
    %14 = vector.broadcast %cst_10 : f32 to vector<8x128xf32>
    %15 = arith.addf %14, %13 : vector<8x128xf32>
    %16 = arith.divf %14, %15 : vector<8x128xf32>
    %17 = vector.extract_strided_slice %10 {offsets = [0, 128], sizes = [8, 128], strides = [1, 1]} : vector<8x512xf32> to vector<8x128xf32>
    %18 = arith.negf %17 : vector<8x128xf32>
    %19 = math.exp %18 : vector<8x128xf32>
    %cst_11 = arith.constant 1.000000e+00 : f32
    %20 = vector.broadcast %cst_11 : f32 to vector<8x128xf32>
    %21 = arith.addf %20, %19 : vector<8x128xf32>
    %22 = arith.divf %20, %21 : vector<8x128xf32>
    %23 = vector.extract_strided_slice %10 {offsets = [0, 256], sizes = [8, 128], strides = [1, 1]} : vector<8x512xf32> to vector<8x128xf32>
    %24 = arith.negf %23 : vector<8x128xf32>
    %25 = math.exp %24 : vector<8x128xf32>
    %cst_12 = arith.constant 1.000000e+00 : f32
    %26 = vector.broadcast %cst_12 : f32 to vector<8x128xf32>
    %27 = arith.addf %26, %25 : vector<8x128xf32>
    %28 = arith.divf %26, %27 : vector<8x128xf32>
    %29 = vector.extract_strided_slice %10 {offsets = [0, 384], sizes = [8, 128], strides = [1, 1]} : vector<8x512xf32> to vector<8x128xf32>
    %30 = math.tanh %29 : vector<8x128xf32>
    %31 = arith.mulf %22, %5 : vector<8x128xf32>
    %32 = arith.mulf %16, %30 : vector<8x128xf32>
    %33 = arith.addf %31, %32 : vector<8x128xf32>
    %34 = math.tanh %33 : vector<8x128xf32>
    %35 = arith.mulf %28, %34 : vector<8x128xf32>
    %c0_13 = arith.constant 0 : index
    %36 = arith.index_cast %c0_i32_6 : i32 to index
    %c0_14 = arith.constant 0 : index
    %c0_15 = arith.constant 0 : index
    %37 = vector.load %arg6[%c0_13, %36, %c0_14, %c0_15] : memref<1x1x8x128xf32, #tpu.memory_space<vmem>>, vector<1x1x8x128xf32>
    %38 = vector.shape_cast %37 : vector<1x1x8x128xf32> to vector<8x128xf32>
    %39 = vector.shape_cast %35 : vector<8x128xf32> to vector<1x1x8x128xf32>
    tpu.vector_store %arg6[%c0_13, %36, %c0_14, %c0_15], %39 {strides = array<i32>} : memref<1x1x8x128xf32, #tpu.memory_space<vmem>>, vector<1x1x8x128xf32>,
    %c1_i32 = arith.constant 1 : i32
    %c0_16 = arith.constant 0 : index
    %c0_17 = arith.constant 0 : index
    %40 = vector.load %arg9[%c0_16, %c0_17] : memref<8x128xf32, #tpu.memory_space<vmem>>, vector<8x128xf32>
    tpu.vector_store %arg9[%c0_16, %c0_17], %35 {strides = array<i32>} : memref<8x128xf32, #tpu.memory_space<vmem>>, vector<8x128xf32>,
    %c0_18 = arith.constant 0 : index
    %c0_19 = arith.constant 0 : index
    %41 = vector.load %arg10[%c0_18, %c0_19] : memref<8x128xf32, #tpu.memory_space<vmem>>, vector<8x128xf32>
    tpu.vector_store %arg10[%c0_18, %c0_19], %33 {strides = array<i32>} : memref<8x128xf32, #tpu.memory_space<vmem>>, vector<8x128xf32>,
    %c0_i32_20 = arith.constant 0 : i32
    %42 = arith.cmpi eq, %arg1, %c0_i32_20 : i32
    %43 = arith.extui %42 : i1 to i32
    %c0_i32_21 = arith.constant 0 : i32
    %44 = arith.cmpi ne, %43, %c0_i32_21 : i32
    scf.if %44 {
      %c0_22 = arith.constant 0 : index
      %c0_23 = arith.constant 0 : index
      %45 = vector.load %arg7[%c0_22, %c0_23] : memref<8x128xf32, #tpu.memory_space<vmem>>, vector<8x128xf32>
      tpu.vector_store %arg7[%c0_22, %c0_23], %35 {strides = array<i32>} : memref<8x128xf32, #tpu.memory_space<vmem>>, vector<8x128xf32>,
      %c0_24 = arith.constant 0 : index
      %c0_25 = arith.constant 0 : index
      %46 = vector.load %arg8[%c0_24, %c0_25] : memref<8x128xf32, #tpu.memory_space<vmem>>, vector<8x128xf32>
      tpu.vector_store %arg8[%c0_24, %c0_25], %33 {strides = array<i32>} : memref<8x128xf32, #tpu.memory_space<vmem>>, vector<8x128xf32>,
    } else {
    }
    return
  }
  func.func @transform_0(%arg0: i32, %arg1: i32) -> (i32, i32, i32, i32) {
    %c0_i32 = arith.constant 0 : i32
    %c0_i32_0 = arith.constant 0 : i32
    %c0_i32_1 = arith.constant 0 : i32
    return %arg0, %arg1, %c0_i32, %c0_i32_0 : i32, i32, i32, i32
  }
  func.func @transform_1(%arg0: i32, %arg1: i32) -> (i32, i32) {
    %c0_i32 = arith.constant 0 : i32
    %c0_i32_0 = arith.constant 0 : i32
    return %arg0, %c0_i32 : i32, i32
  }
  func.func @transform_2(%arg0: i32, %arg1: i32) -> (i32, i32) {
    %c0_i32 = arith.constant 0 : i32
    %c0_i32_0 = arith.constant 0 : i32
    return %arg0, %c0_i32 : i32, i32
  }
  func.func @transform_3(%arg0: i32, %arg1: i32) -> (i32, i32) {
    %c0_i32 = arith.constant 0 : i32
    %c0_i32_0 = arith.constant 0 : i32
    %c0_i32_1 = arith.constant 0 : i32
    return %c0_i32, %c0_i32_0 : i32, i32
  }
  func.func @transform_4(%arg0: i32, %arg1: i32) -> (i32, i32, i32, i32) {
    %c0_i32 = arith.constant 0 : i32
    %c0_i32_0 = arith.constant 0 : i32
    %c0_i32_1 = arith.constant 0 : i32
    return %arg0, %arg1, %c0_i32, %c0_i32_0 : i32, i32, i32, i32
  }
  func.func @transform_5(%arg0: i32, %arg1: i32) -> (i32, i32) {
    %c0_i32 = arith.constant 0 : i32
    %c0_i32_0 = arith.constant 0 : i32
    return %arg0, %c0_i32 : i32, i32
  }
  func.func @transform_6(%arg0: i32, %arg1: i32) -> (i32, i32) {
    %c0_i32 = arith.constant 0 : i32
    %c0_i32_0 = arith.constant 0 : i32
    return %arg0, %c0_i32 : i32, i32
  }
}

</mosaic_0001>

<bundles_post_ra>
// kernel: lstm_cell_sequence.1
= control target key start
LH: loop header
LB: loop body
LE: loop exit
PB: predicated region body
PF: predicated region fallthrough
CT: control target
= control target key end

     0   :  { %v372_v3 = vmov 0.0   ;;  %s627_s3 = inlined_call_operand.vmem [shape: f32[128,512], index: 3, kind: input, shape index: {}]   ;;  %s628_s1 = inlined_call_operand.vmem [shape: f32[8,128], index: 1, kind: input, shape index: {}]   ;;  %s629_s0 = inlined_call_operand.vmem [shape: f32[1,1,8,512], index: 0, kind: input, shape index: {}]   ;;  %s630_s2 = inlined_call_operand.vmem [shape: f32[8,128], index: 2, kind: input, shape index: {}]   ;;  %s631_s6 = inlined_call_operand.vmem [shape: f32[8,128], index: 6, kind: output, shape index: {2}]   ;;  %s632_s4 = inlined_call_operand.vmem [shape: f32[1,1,8,128], index: 4, kind: output, shape index: {0}]   ;;  %s633_s5 = inlined_call_operand.vmem [shape: f32[8,128], index: 5, kind: output, shape index: {1}]  }
   0x1   :  { %v29_v0 = vld [vmem:[%s627_s3 + $0x8] sm:$0xff]  ;;  %v28_v2 = vld [vmem:[%s627_s3] sm:$0xff]  ;;  %162 = vmatprep.mubr.f32.mxu0 %v372_v3  ;;  %233 = vmatprep.mubr.f32.mxu1 %v372_v3  ;;  %v31_v19 = vld [vmem:[%s627_s3 + $0x18] sm:$0xff] }
   0x2   :  { %v33_v1 = vld [vmem:[%s627_s3 + $0x28] sm:$0xff]  ;;  %v32_v5 = vld [vmem:[%s627_s3 + $0x20] sm:$0xff]  ;;  %v35_v20 = vld [vmem:[%s627_s3 + $0x38] sm:$0xff] }
   0x3   :  { %v291_v4 = vpack.c.bf16 %v33_v1, %v29_v0  ;;  %v37_v6 = vld [vmem:[%s627_s3 + $0x48] sm:$0xff]  ;;  %v293_v8 = vpack.c.bf16 %v32_v5, %v28_v2  ;;  %v36_v10 = vld [vmem:[%s627_s3 + $0x40] sm:$0xff]  ;;  %v323_v22 = vpack.c.bf16 %v35_v20, %v31_v19  ;;  %v30_v23 = vld [vmem:[%s627_s3 + $0x10] sm:$0xff] }
   0x4   :  { %v41_v7 = vld [vmem:[%s627_s3 + $0x68] sm:$0xff]  ;;  %v40_v11 = vld [vmem:[%s627_s3 + $0x60] sm:$0xff]  ;;  %v34_v24 = vld [vmem:[%s627_s3 + $0x30] sm:$0xff] }
   0x5   :  { %v295_v9 = vpack.c.bf16 %v41_v7, %v37_v6  ;;  %v45_v12 = vld [vmem:[%s627_s3 + $0x88] sm:$0xff]  ;;  %292 = vmatprep.subr.bf16.mxu0 %v291_v4  ;;  %v297_v14 = vpack.c.bf16 %v40_v11, %v36_v10  ;;  %v44_v15 = vld [vmem:[%s627_s3 + $0x80] sm:$0xff]  ;;  %v325_v25 = vpack.c.bf16 %v34_v24, %v30_v23  ;;  %324 = vmatprep.subr.bf16.mxu1 %v323_v22  ;;  %v39_v27 = vld [vmem:[%s627_s3 + $0x58] sm:$0xff] }
   0x6   :  { %v49_v13 = vld [vmem:[%s627_s3 + $0xa8] sm:$0xff]  ;;  %294 = vmatpush1.bf16.msra.mxu0 %v293_v8  ;;  %v48_v16 = vld [vmem:[%s627_s3 + $0xa0] sm:$0xff]  ;;  %v43_v28 = vld [vmem:[%s627_s3 + $0x78] sm:$0xff] }
   0x7   :  { %296 = vmatprep.subr.bf16.mxu0 %v295_v9  ;;  %v299_v17 = vpack.c.bf16 %v49_v13, %v45_v12  ;;  %v53_v18 = vld [vmem:[%s627_s3 + $0xc8] sm:$0xff]  ;;  %v301_v26 = vpack.c.bf16 %v48_v16, %v44_v15  ;;  %v38_v29 = vld [vmem:[%s627_s3 + $0x50] sm:$0xff]  ;;  %v52_v31 = vld [vmem:[%s627_s3 + $0xc0] sm:$0xff]  ;;  %326 = vmatpush1.bf16.msra.mxu1 %v325_v25  ;;  %v327_v33 = vpack.c.bf16 %v43_v28, %v39_v27 }
   0x8   :  { %v57_v21 = vld [vmem:[%s627_s3 + $0xe8] sm:$0xff]  ;;  %v56_v32 = vld [vmem:[%s627_s3 + $0xe0] sm:$0xff]  ;;  %v42_v34 = vld [vmem:[%s627_s3 + $0x70] sm:$0xff] }
   0x9   :  { %v303_v30 = vpack.c.bf16 %v57_v21, %v53_v18  ;;  %v61_v35 = vld [vmem:[%s627_s3 + $0x108] sm:$0xff]  ;;  %v329_v37 = vpack.c.bf16 %v42_v34, %v38_v29  ;;  %v47_v38 = vld [vmem:[%s627_s3 + $0x98] sm:$0xff]  ;;  %328 = vmatprep.subr.bf16.mxu1 %v327_v33  ;;  %v46_v40 = vld [vmem:[%s627_s3 + $0x90] sm:$0xff]  ;;  %v305_v42 = vpack.c.bf16 %v56_v32, %v52_v31 }
   0xa   :  { %298 = vmatpush1.bf16.msra.mxu0 %v297_v14  ;;  %v65_v36 = vld [vmem:[%s627_s3 + $0x128] sm:$0xff]  ;;  %v51_v39 = vld [vmem:[%s627_s3 + $0xb8] sm:$0xff]  ;;  %v50_v41 = vld [vmem:[%s627_s3 + $0xb0] sm:$0xff] }
   0xb   :  { %300 = vmatprep.subr.bf16.mxu0 %v299_v17  ;;  %v60_v43 = vld [vmem:[%s627_s3 + $0x100] sm:$0xff]  ;;  %v331_v45 = vpack.c.bf16 %v51_v39, %v47_v38  ;;  %v307_v46 = vpack.c.bf16 %v65_v36, %v61_v35  ;;  %330 = vmatpush1.bf16.msra.mxu1 %v329_v37  ;;  %v69_v47 = vld [vmem:[%s627_s3 + $0x148] sm:$0xff]  ;;  %v333_v48 = vpack.c.bf16 %v50_v41, %v46_v40  ;;  %v55_v49 = vld [vmem:[%s627_s3 + $0xd8] sm:$0xff] }
   0xc   :  { %v64_v44 = vld [vmem:[%s627_s3 + $0x120] sm:$0xff]  ;;  %v59_v50 = vld [vmem:[%s627_s3 + $0xf8] sm:$0xff]  ;;  %v73_v51 = vld [vmem:[%s627_s3 + $0x168] sm:$0xff] }
   0xd   :  { %332 = vmatprep.subr.bf16.mxu1 %v331_v45  ;;  %v335_v52 = vpack.c.bf16 %v59_v50, %v55_v49  ;;  %v54_v53 = vld [vmem:[%s627_s3 + $0xd0] sm:$0xff]  ;;  %v309_v55 = vpack.c.bf16 %v64_v44, %v60_v43  ;;  %v63_v56 = vld [vmem:[%s627_s3 + $0x118] sm:$0xff]  ;;  %v311_v58 = vpack.c.bf16 %v73_v51, %v69_v47  ;;  %v68_v59 = vld [vmem:[%s627_s3 + $0x140] sm:$0xff] }
   0xe   :  { %302 = vmatpush1.bf16.msra.mxu0 %v301_v26  ;;  %v58_v54 = vld [vmem:[%s627_s3 + $0xf0] sm:$0xff]  ;;  %v67_v57 = vld [vmem:[%s627_s3 + $0x138] sm:$0xff]  ;;  %v72_v60 = vld [vmem:[%s627_s3 + $0x160] sm:$0xff] }
   0xf   :  { %304 = vmatprep.subr.bf16.mxu0 %v303_v30  ;;  %334 = vmatpush1.bf16.msra.mxu1 %v333_v48  ;;  %v77_v61 = vld [vmem:[%s627_s3 + $0x188] sm:$0xff]  ;;  %v337_v62 = vpack.c.bf16 %v58_v54, %v54_v53  ;;  %v339_v0 = vpack.c.bf16 %v67_v57, %v63_v56  ;;  %v62_v1 = vld [vmem:[%s627_s3 + $0x110] sm:$0xff]  ;;  %v71_v3 = vld [vmem:[%s627_s3 + $0x158] sm:$0xff]  ;;  %v313_v5 = vpack.c.bf16 %v72_v60, %v68_v59 }
  0x10   :  { %v81_v63 = vld [vmem:[%s627_s3 + $0x1a8] sm:$0xff]  ;;  %336 = vmatprep.subr.bf16.mxu1 %v335_v52  ;;  %v66_v2 = vld [vmem:[%s627_s3 + $0x130] sm:$0xff]  ;;  %v75_v4 = vld [vmem:[%s627_s3 + $0x178] sm:$0xff] }
  0x11   :  { %v315_v6 = vpack.c.bf16 %v81_v63, %v77_v61  ;;  %v76_v7 = vld [vmem:[%s627_s3 + $0x180] sm:$0xff]  ;;  %v85_v9 = vld [vmem:[%s627_s3 + $0x1c8] sm:$0xff]  ;;  %v341_v10 = vpack.c.bf16 %v66_v2, %v62_v1  ;;  %v343_v12 = vpack.c.bf16 %v75_v4, %v71_v3  ;;  %v70_v13 = vld [vmem:[%s627_s3 + $0x150] sm:$0xff] }
  0x12   :  { %306 = vmatpush1.bf16.msra.mxu0 %v305_v42  ;;  %v80_v8 = vld [vmem:[%s627_s3 + $0x1a0] sm:$0xff]  ;;  %v89_v11 = vld [vmem:[%s627_s3 + $0x1e8] sm:$0xff]  ;;  %v74_v14 = vld [vmem:[%s627_s3 + $0x170] sm:$0xff] }
  0x13   :  { %308 = vmatprep.subr.bf16.mxu0 %v307_v46  ;;  %338 = vmatpush1.bf16.msra.mxu1 %v337_v62  ;;  %v79_v15 = vld [vmem:[%s627_s3 + $0x198] sm:$0xff]  ;;  %v317_v17 = vpack.c.bf16 %v80_v8, %v76_v7  ;;  %v319_v18 = vpack.c.bf16 %v89_v11, %v85_v9  ;;  %v84_v19 = vld [vmem:[%s627_s3 + $0x1c0] sm:$0xff]  ;;  %v345_v21 = vpack.c.bf16 %v74_v14, %v70_v13  ;;  %v78_v23 = vld [vmem:[%s627_s3 + $0x190] sm:$0xff] }
  0x14   :  { %340 = vmatprep.subr.bf16.mxu1 %v339_v0  ;;  %v83_v16 = vld [vmem:[%s627_s3 + $0x1b8] sm:$0xff]  ;;  %v88_v20 = vld [vmem:[%s627_s3 + $0x1e0] sm:$0xff]  ;;  %v82_v24 = vld [vmem:[%s627_s3 + $0x1b0] sm:$0xff] }
  0x15   :  { %v347_v22 = vpack.c.bf16 %v83_v16, %v79_v15  ;;  %v87_v25 = vld [vmem:[%s627_s3 + $0x1d8] sm:$0xff]  ;;  %v321_v27 = vpack.c.bf16 %v88_v20, %v84_v19  ;;  %v349_v28 = vpack.c.bf16 %v82_v24, %v78_v23  ;;  %v86_v30 = vld [vmem:[%s627_s3 + $0x1d0] sm:$0xff]  ;;  %v24_v32 = vld [vmem:[%s628_s1] sm:$0xff] }
  0x16   :  { %310 = vmatpush1.bf16.msra.mxu0 %v309_v55  ;;  %v91_v26 = vld [vmem:[%s627_s3 + $0x1f8] sm:$0xff]  ;;  %v90_v31 = vld [vmem:[%s627_s3 + $0x1f0] sm:$0xff]  ;;  %v94_v34 = vld [vmem:[%s629_s0] sm:$0xff] }
  0x17   :  { %312 = vmatprep.subr.bf16.mxu0 %v311_v58  ;;  %342 = vmatpush1.bf16.msra.mxu1 %v341_v10  ;;  %v351_v29 = vpack.c.bf16 %v91_v26, %v87_v25  ;;  %v353_v33 = vpack.c.bf16 %v90_v31, %v86_v30  ;;  %v95_v35 = vld [vmem:[%s629_s0 + $0x8] sm:$0xff]  ;;  %v96_v42 = vld [vmem:[%s629_s0 + $0x10] sm:$0xff]  ;;  %v97_v46 = vld [vmem:[%s629_s0 + $0x18] sm:$0xff] }
  0x18   :  { %344 = vmatprep.subr.bf16.mxu1 %v343_v12  ;;  %v26_v55 = vld [vmem:[%s630_s2] sm:$0xff] }
  0x1a   :  { %314 = vmatpush1.bf16.msra.mxu0 %v313_v5 }
  0x1b   :  { %316 = vmatprep.subr.bf16.mxu0 %v315_v6  ;;  %346 = vmatpush1.bf16.msra.mxu1 %v345_v21 }
  0x1c   :  { %348 = vmatprep.subr.bf16.mxu1 %v347_v22 }
  0x1e   :  { %318 = vmatpush1.bf16.msra.mxu0 %v317_v17 }
  0x1f   :  { %320 = vmatprep.subr.bf16.mxu0 %v319_v18  ;;  %350 = vmatpush1.bf16.msra.mxu1 %v349_v28 }
  0x20   :  { %352 = vmatprep.subr.bf16.mxu1 %v351_v29 }
  0x22   :  { %322 = vmatpush1.bf16.msra.mxu0 %v321_v27 }
  0x23   :  { %354 = vmatpush1.bf16.msra.mxu1 %v353_v33 }
  0x25   :  { %163 = vmatmul.mubr.f32.vlgmr.msra.gmra.mrb[0].mxu0 %v24_v32 }
  0x26   :  { %234 = vmatmul.mubr.f32.vlgmr.msra.gmra.mrb[0].mxu1 %v24_v32 }
  0xf8   :  { %v164_v36 = vpop.f32.mrb[0].mxu0 }
  0xf9   :  { %v240_v37 = vadd.f32 %v164_v36, %v94_v34  ;;  %v166_v38 = vpop.f32.mrb[1].mxu0  ;;  %v235_v43 = vpop.f32.mrb[0].mxu1 }
  0xfa   :  { %v241_v39 = vadd.f32 %v166_v38, %v95_v35  ;;  %v237_v44 = vpop.f32.mrb[1].mxu1  ;;  %v242_v45 = vadd.f32 %v235_v43, %v96_v42 }
  0xfb   :  { %v288_v40 = vmul.f32 -1.442695, %v240_v37  ;;  %v243_v48 = vadd.f32 %v237_v44, %v97_v46 }
  0xfc   :  { %v289_v41 = vmul.f32 -1.442695, %v241_v39  ;;  %v290_v47 = vmul.f32 -1.442695, %v242_v45 }
  0xfd   :  { %356 = vpow2.f32 %v288_v40 }
  0xfe   :  { %358 = vpow2.f32 %v289_v41 }
  0xff   :  { %360 = vpow2.f32 %v290_v47 }
 0x100   :  { %362 = vtanh.f32 %v243_v48 }
 0x107   :  { %v357_v49 = vpop.eup %356 }
 0x108   :  { %v359_v50 = vpop.eup %358  ;;  %v247_v51 = vadd.f32 1.0, %v357_v49 }
 0x109   :  { %v253_v52 = vadd.f32 1.0, %v359_v50  ;;  %v361_v53 = vpop.eup %360 }
 0x10a   :  { %364 = vrcp.f32 %v247_v51  ;;  %v363_v54 = vpop.eup %362  ;;  %v259_v57 = vadd.f32 1.0, %v361_v53 }
 0x10b   :  { %366 = vrcp.f32 %v253_v52 }
 0x10c   :  { %368 = vrcp.f32 %v259_v57 }
 0x114   :  { %v365_v56 = vpop.eup %364 }
 0x115   :  { %v367_v58 = vpop.eup %366  ;;  %v264_v59 = vmul.f32 %v365_v56, %v363_v54 }
 0x116   :  { %v263_v60 = vmul.f32 %v367_v58, %v26_v55  ;;  %v369_v62 = vpop.eup %368 }
 0x118   :  { %v265_v61 = vadd.f32 %v264_v59, %v263_v60 }
 0x11a   :  { %370 = vtanh.f32 %v265_v61  ;;  %275 = vst [vmem:[%s631_s6] sm:$0xff] %v265_v61 }
 0x124   :  { %v371_v63 = vpop.eup %370 }
 0x125   :  { %v267_v0 = vmul.f32 %v371_v63, %v369_v62 }
 0x127   :  { %268 = vst [vmem:[%s632_s4] sm:$0xff] %v267_v0  ;;  %274 = vst [vmem:[%s633_s5] sm:$0xff] %v267_v0 }

</bundles_post_ra>
